<compile_context>
chip_gen: v6e
topology: v6e:2x2x1
jax: 0.10.0
libtpu: 0.0.40
codegen_flags: <defaults>
</compile_context>

<pallas_src>
import math

import jax
import jax.numpy as jnp
from jax.experimental import pallas as pl
from jax.experimental.pallas import tpu as pltpu


def _gated_fusion_kernel(x_ref, y_ref, wx_ref, wy_ref, shift_ref, o_ref):
    # x_ref/y_ref/o_ref: (tB*C, tT)   wx/wy: (tB*C, tB*C) block-diagonal
    # shift: (tB*C, 1)
    x = x_ref[...]                       # input dtype (f32 or bf16)
    y = y_ref[...]
    z = (jnp.dot(wx_ref[...], x.astype(jnp.float32),
                 preferred_element_type=jnp.float32)
         + jnp.dot(wy_ref[...], y.astype(jnp.float32),
                   preferred_element_type=jnp.float32)
         + shift_ref[...])
    g = jax.nn.sigmoid(z).astype(x.dtype)      # EUP slot; blend in input dtype
    o_ref[...] = (y + g * (x - y)).astype(o_ref.dtype)


def _pick_tiles(BN, C, T, itemsize, *, t_tile_max=2048,
                tile_bytes_target=2 * 1024 * 1024, max_k=256):
    """Pick (tB, tT) for blocks of shape (tB*C, tT) over a (BN*C, T) array."""
    # T tile: full T if it fits, else a multiple of 128 (ragged tail via cdiv).
    tT = T if T <= t_tile_max else t_tile_max
    n_t = -(-T // tT)

    # Row alignment so tB*C is a multiple of 8 (sublane tile).
    align = 8 // math.gcd(C, 8)
    if BN < align:
        return BN, tT                    # full row extent -> always legal

    # Cap tB: fill (but don't exceed) one MXU contraction, stay in tile budget.
    cap = max(align, max_k // C) if C <= max_k else align
    cap = min(cap, BN)
    while cap > align and cap * C * tT * itemsize > tile_bytes_target:
        cap -= align
    cap = max(cap, align)

    # Keep >= 2 grid steps overall (megacore sharding on v7x).
    if n_t == 1 and cap >= BN and BN > align:
        cap = BN - 1

    # Prefer the largest multiple of `align` that divides BN (no ragged rows);
    # otherwise accept a ragged BN tail (cdiv grid, masked writes).
    tB = None
    t = (cap // align) * align
    while t >= align:
        if BN % t == 0:
            tB = t
            break
        t -= align
    if tB is None:
        tB = max(align, (cap // align) * align)
    return tB, tT


def gated_fusion(x, y, conv_w, conv_b, bn_gamma, bn_beta, bn_mean, bn_var,
                 *, eps=1e-5, t_tile_max=2048):
    """x, y: (B, N, C, T). conv_w: (C_out, 2C, 1), conv_b: (C_out,)."""
    B, N, C, T = x.shape
    c_out = conv_w.shape[0]
    assert c_out == C, "default GatedFusion has out_channels == in_channels"

    # Fold BatchNorm (eval) running stats AND conv bias into the weights.
    scale = bn_gamma / jnp.sqrt(bn_var + eps)                      # (C_out,)
    shift = bn_beta - bn_mean * scale                              # (C_out,)
    wx = (conv_w[:, :C, 0] * scale[:, None]).astype(jnp.float32)   # (C_out, C)
    wy = (conv_w[:, C:, 0] * scale[:, None]).astype(jnp.float32)   # (C_out, C)
    shift2 = (conv_b * scale + shift).astype(jnp.float32)          # (C_out,)

    BN = B * N
    tB, tT = _pick_tiles(BN, C, T, x.dtype.itemsize, t_tile_max=t_tile_max)

    # Block-diagonal weights so each grid step is one full-K matmul pair.
    eye = jnp.eye(tB, dtype=jnp.float32)
    wx_k = jnp.kron(eye, wx)                                   # (tB*C, tB*C)
    wy_k = jnp.kron(eye, wy)
    sh_k = jnp.tile(shift2, tB).reshape(tB * c_out, 1)         # (tB*C, 1)

    # Free views: flatten to lane-dense 2D (BN*C, T); T stays on the lane axis.
    x2 = x.reshape(BN * C, T)
    y2 = y.reshape(BN * C, T)

    grid = (pl.cdiv(BN, tB), pl.cdiv(T, tT))

    row_spec = pl.BlockSpec((tB * C, tT), lambda b, j: (b, j))
    out_spec = pl.BlockSpec((tB * c_out, tT), lambda b, j: (b, j))
    wx_spec = pl.BlockSpec((tB * c_out, tB * C), lambda b, j: (0, 0))
    wy_spec = pl.BlockSpec((tB * c_out, tB * C), lambda b, j: (0, 0))
    sh_spec = pl.BlockSpec((tB * c_out, 1), lambda b, j: (0, 0))

    out2 = pl.pallas_call(
        _gated_fusion_kernel,
        out_shape=jax.ShapeDtypeStruct((BN * c_out, T), x.dtype),
        grid_spec=pltpu.PrefetchScalarGridSpec(
            num_scalar_prefetch=0,
            grid=grid,
            in_specs=[row_spec, row_spec, wx_spec, wy_spec, sh_spec],
            out_specs=out_spec,
        ),
        compiler_params=pltpu.CompilerParams(
            dimension_semantics=("parallel", "parallel"),
            vmem_limit_bytes=32 * 1024 * 1024),
    )(x2, y2, wx_k, wy_k, sh_k)

    return out2.reshape(B, N, c_out, T)


def _reference(x, y, conv_w, conv_b, bn_gamma, bn_beta, bn_mean, bn_var,
               eps=1e-5):
    B, N, C, T = x.shape
    x3 = x.reshape(B * N, C, T)
    y3 = y.reshape(B * N, C, T)
    cat = jnp.concatenate([x3, y3], axis=1)                 # (BN, 2C, T)
    z = jnp.einsum('oc,bct->bot', conv_w[:, :, 0], cat) + conv_b[None, :, None]
    z = (z - bn_mean[None, :, None]) / jnp.sqrt(bn_var[None, :, None] + eps)
    z = z * bn_gamma[None, :, None] + bn_beta[None, :, None]
    g = jax.nn.sigmoid(z)
    out = g * x3 + (1.0 - g) * y3
    return out.reshape(B, N, C, T)


if __name__ == "__main__":
    key = jax.random.PRNGKey(0)
    B, N, C, T = 2, 4, 8, 16
    k1, k2, k3, k4 = jax.random.split(key, 4)

    x = jax.random.normal(k1, (B, N, C, T), dtype=jnp.float32)
    y = jax.random.normal(k2, (B, N, C, T), dtype=jnp.float32)

    # Conv1d(2C, C, kernel_size=1): weight (C, 2C, 1) xavier_uniform(gain=1e-6),
    # bias ~ U(-1/sqrt(fan_in), 1/sqrt(fan_in)) with fan_in = 2C.
    xav_bound = 1e-6 * (6.0 / (2 * C + C)) ** 0.5
    conv_w = jax.random.uniform(k3, (C, 2 * C, 1), dtype=jnp.float32,
                                minval=-xav_bound, maxval=xav_bound)
    b_bound = 1.0 / (2 * C) ** 0.5
    conv_b = jax.random.uniform(k4, (C,), dtype=jnp.float32,
                                minval=-b_bound, maxval=b_bound)

    # BatchNorm1d(C) running stats (eval mode).
    bn_gamma = jnp.ones((C,), jnp.float32)
    bn_beta = jnp.zeros((C,), jnp.float32)
    bn_mean = jnp.zeros((C,), jnp.float32)
    bn_var = jnp.ones((C,), jnp.float32)
    # TODO(synk): Dropout layers (p=0.1, p=0.01) are identity at inference; no
    # stochastic dropout is applied in the kernel.

    out = gated_fusion(x, y, conv_w, conv_b, bn_gamma, bn_beta, bn_mean, bn_var)
    out = jax.block_until_ready(out)

    ref = _reference(x, y, conv_w, conv_b, bn_gamma, bn_beta, bn_mean, bn_var)
    assert out.shape == (B, N, C, T)
    assert jnp.allclose(out, ref, atol=1e-5, rtol=1e-5), "mismatch vs reference"

    print("KERNEL_OK")
</pallas_src>

<mosaic_0001>
module attributes {stable_mosaic.version = 11 : i64} {
  func.func @_gated_fusion_kernel(%arg0: i32, %arg1: i32, %arg2: memref<32x16xf32, #tpu.memory_space<vmem>>, %arg3: memref<32x16xf32, #tpu.memory_space<vmem>>, %arg4: memref<32x32xf32, #tpu.memory_space<vmem>>, %arg5: memref<32x32xf32, #tpu.memory_space<vmem>>, %arg6: memref<32x1xf32, #tpu.memory_space<vmem>>, %arg7: memref<32x16xf32, #tpu.memory_space<vmem>>) attributes {dimension_semantics = [#tpu.dimension_semantics<parallel>, #tpu.dimension_semantics<parallel>], iteration_bounds = array<i64: 2, 1>, scalar_prefetch = 0 : i64, scratch_operands = 0 : i64, tpu.core_type = #tpu.core_type<tc>, window_params = [{transform_indices = @transform_0, window_bounds = array<i64: 32, 16>}, {transform_indices = @transform_1, window_bounds = array<i64: 32, 16>}, {pipeline_mode = #tpu.pipeline_mode<synchronous>, transform_indices = @transform_2, window_bounds = array<i64: 32, 32>}, {pipeline_mode = #tpu.pipeline_mode<synchronous>, transform_indices = @transform_3, window_bounds = array<i64: 32, 32>}, {pipeline_mode = #tpu.pipeline_mode<synchronous>, transform_indices = @transform_4, window_bounds = array<i64: 32, 1>}, {transform_indices = @transform_5, window_bounds = array<i64: 32, 16>}]} {
    %c0 = arith.constant 0 : index
    %c0_0 = arith.constant 0 : index
    %0 = vector.load %arg2[%c0, %c0_0] : memref<32x16xf32, #tpu.memory_space<vmem>>, vector<32x16xf32>
    %c0_1 = arith.constant 0 : index
    %c0_2 = arith.constant 0 : index
    %1 = vector.load %arg3[%c0_1, %c0_2] : memref<32x16xf32, #tpu.memory_space<vmem>>, vector<32x16xf32>
    %c0_3 = arith.constant 0 : index
    %c0_4 = arith.constant 0 : index
    %2 = vector.load %arg4[%c0_3, %c0_4] : memref<32x32xf32, #tpu.memory_space<vmem>>, vector<32x32xf32>
    %cst = arith.constant dense<0.000000e+00> : vector<32x16xf32>
    %3 = tpu.matmul %2, %0, %cst {dimension_numbers = #tpu.dot_dimension_numbers<[1], [0], [0], [1], [0, 0, 1, 1], [], []>} : vector<32x32xf32>, vector<32x16xf32>, vector<32x16xf32> -> vector<32x16xf32>
    %c0_5 = arith.constant 0 : index
    %c0_6 = arith.constant 0 : index
    %4 = vector.load %arg5[%c0_5, %c0_6] : memref<32x32xf32, #tpu.memory_space<vmem>>, vector<32x32xf32>
    %cst_7 = arith.constant dense<0.000000e+00> : vector<32x16xf32>
    %5 = tpu.matmul %4, %1, %cst_7 {dimension_numbers = #tpu.dot_dimension_numbers<[1], [0], [0], [1], [0, 0, 1, 1], [], []>} : vector<32x32xf32>, vector<32x16xf32>, vector<32x16xf32> -> vector<32x16xf32>
    %6 = arith.addf %3, %5 : vector<32x16xf32>
    %c0_8 = arith.constant 0 : index
    %c0_9 = arith.constant 0 : index
    %7 = vector.load %arg6[%c0_8, %c0_9] : memref<32x1xf32, #tpu.memory_space<vmem>>, vector<32x1xf32>
    %8 = vector.broadcast %7 : vector<32x1xf32> to vector<32x16xf32>
    %9 = arith.addf %6, %8 : vector<32x16xf32>
    %10 = arith.negf %9 : vector<32x16xf32>
    %11 = math.exp %10 : vector<32x16xf32>
    %cst_10 = arith.constant 1.000000e+00 : f32
    %12 = vector.broadcast %cst_10 : f32 to vector<32x16xf32>
    %13 = arith.addf %12, %11 : vector<32x16xf32>
    %14 = arith.divf %12, %13 : vector<32x16xf32>
    %15 = arith.subf %0, %1 : vector<32x16xf32>
    %16 = arith.mulf %14, %15 : vector<32x16xf32>
    %17 = arith.addf %1, %16 : vector<32x16xf32>
    %c0_11 = arith.constant 0 : index
    %c0_12 = arith.constant 0 : index
    %18 = vector.load %arg7[%c0_11, %c0_12] : memref<32x16xf32, #tpu.memory_space<vmem>>, vector<32x16xf32>
    tpu.vector_store %arg7[%c0_11, %c0_12], %17 {strides = array<i32>} : memref<32x16xf32, #tpu.memory_space<vmem>>, vector<32x16xf32>,
    return
  }
  func.func @transform_0(%arg0: i32, %arg1: i32) -> (i32, i32) {
    %c0_i32 = arith.constant 0 : i32
    return %arg0, %arg1 : i32, i32
  }
  func.func @transform_1(%arg0: i32, %arg1: i32) -> (i32, i32) {
    %c0_i32 = arith.constant 0 : i32
    return %arg0, %arg1 : i32, i32
  }
  func.func @transform_2(%arg0: i32, %arg1: i32) -> (i32, i32) {
    %c0_i32 = arith.constant 0 : i32
    %c0_i32_0 = arith.constant 0 : i32
    %c0_i32_1 = arith.constant 0 : i32
    return %c0_i32, %c0_i32_0 : i32, i32
  }
  func.func @transform_3(%arg0: i32, %arg1: i32) -> (i32, i32) {
    %c0_i32 = arith.constant 0 : i32
    %c0_i32_0 = arith.constant 0 : i32
    %c0_i32_1 = arith.constant 0 : i32
    return %c0_i32, %c0_i32_0 : i32, i32
  }
  func.func @transform_4(%arg0: i32, %arg1: i32) -> (i32, i32) {
    %c0_i32 = arith.constant 0 : i32
    %c0_i32_0 = arith.constant 0 : i32
    %c0_i32_1 = arith.constant 0 : i32
    return %c0_i32, %c0_i32_0 : i32, i32
  }
  func.func @transform_5(%arg0: i32, %arg1: i32) -> (i32, i32) {
    %c0_i32 = arith.constant 0 : i32
    return %arg0, %arg1 : i32, i32
  }
}

</mosaic_0001>

<bundles_post_ra>
// kernel: tpu_custom_call.1
= control target key start
LH: loop header
LB: loop body
LE: loop exit
PB: predicated region body
PF: predicated region fallthrough
CT: control target
= control target key end

     0   :  { %s832_s18 = smov 0   ;;  %s834_s19 = smov 0   ;;  %s961_s0 = inlined_call_operand.vmem [shape: f32[64,16], index: 0, kind: input, shape index: {}]   ;;  %s962_s1 = inlined_call_operand.vmem [shape: f32[64,16], index: 1, kind: input, shape index: {}]   ;;  %s963_s2 = inlined_call_operand.vmem [shape: f32[32,32], index: 2, kind: input, shape index: {}]   ;;  %s964_s3 = inlined_call_operand.vmem [shape: f32[32,32], index: 3, kind: input, shape index: {}]   ;;  %s965_s4 = inlined_call_operand.vmem [shape: f32[32,1], index: 4, kind: input, shape index: {}]   ;;  %s966_s5 = inlined_call_operand.vmem [shape: f32[64,16], index: 5, kind: output, shape index: {}]  }
   0x1   :  { %s836_s20 = smov 0  }
   0x2 LB: > { %s27_s21 = sadd.s32 1, %s795_s19  ;;  %p669_p0 = scmp.ge.s32.totalorder %s799_s20, 1  ;;  %s799_s20 = sphi %s836_s20, %s15_s20   ;;  %s795_s19 = sphi %s834_s19, %s968_s19   ;;  %s791_s18 = sphi %s832_s18, %s967_s18  }
   0x3   : > { %p29_p1 = scmp.ge.s32.totalorder %s27_s21, 2  ;;  %p223_p2 = scmp.lt.s32.totalorder %s799_s20, 3 }
   0x5   : > { %s970_s21 = smov (%p29_p1, %s27_s21), 0  ;;  %p224_p3 = pnand %p669_p0, %p223_p2 }
   0x6   : > { %s670_s22 = sshll.u32 (!%p224_p3), %s791_s18, 2 }
   0x7   : > { %227 = sbr.rel (%p224_p3) target bundleno = 266 (0x10a), region = 40  ;;  %p266_p4 = scmp.lt.s32.totalorder (!%p224_p3), %s670_s22, 7 }
   0xc   : > { %v304_v0 = vld [vmem:[%s964_s3] sm:$0xff]  ;;  %vm308_vm0 = vcmask 261120   ;;  %v801_v2 = vmov 0   ;;  %s972_s22 = smov (!%p266_p4, %s670_s22), 7  ;;  %v505_v4 = vld [vmem:[%s965_s4 + $0x10] sm:$0xff]  ;;  %v504_v5 = vld [vmem:[%s965_s4 + $0x8] sm:$0xff] }
   0xd   : > { %v300_v1 = vld [vmem:[%s963_s2] sm:$0xff]  ;;  %714 = vmatprep.mubr.msk.f32.mxu0 %vm308_vm0, %v304_v0  ;;  %759 = vset.pattern.permute.xlu0 %v801_v2  ;;  %s867_s8 = sshll.u32 %s972_s22, 3  ;;  %v506_v6 = vld [vmem:[%s965_s4 + $0x18] sm:$0xff]  ;;  %v305_v15 = vld [vmem:[%s964_s3 + $0x8] sm:$0xff]  ;;  %vm567_vm1 = vcmask 130048  }
   0xe   : > { %728 = vmatprep.mubr.msk.f32.mxu1 %vm308_vm0, %v300_v1  ;;  %v503_v3 = vld [vmem:[%s965_s4] sm:$0xff]  ;;  %760 = vset.pattern.permute.xlu1 %v801_v2  ;;  %s281_s13 = scalar_lea.vmem %s962_s1, %s867_s8  ;;  %s272_s16 = scalar_lea.vmem %s961_s0, %s867_s8  ;;  %v301_v16 = vld [vmem:[%s963_s2 + $0x8] sm:$0xff]  ;;  %v306_v17 = vld [vmem:[%s964_s3 + $0x10] sm:$0xff] }
   0xf   : > { %509 = vperm.xlu0 %759, %v503_v3   ;;  %519 = vperm.xlu1 %760, %v505_v4   ;;  %v876_v7 = vld [vmem:[%s281_s13 + $0x18] sm:$0xff]  ;;  %v882_v8 = vld [vmem:[%s281_s13 + $0x10] sm:$0xff]  ;;  %v891_v11 = vld [vmem:[%s281_s13 + $0x8] sm:$0xff]  ;;  %s290_s10 = scalar_lea.vmem %s966_s5, %s867_s8 }
  0x10   : > { %706 = vmatprep.subr.mxu0 %v876_v7  ;;  %v885_v9 = vld [vmem:[%s272_s16 + $0x18] sm:$0xff]  ;;  %v887_v10 = vld [vmem:[%s272_s16 + $0x10] sm:$0xff]  ;;  %v895_v12 = vld [vmem:[%s272_s16 + $0x8] sm:$0xff] }
  0x11   : > { %720 = vmatprep.subr.mxu1 %v885_v9  ;;  %707 = vmatpush3.msra.mxu0 %v876_v7  ;;  %v899_v13 = vld [vmem:[%s281_s13] sm:$0xff]  ;;  %v302_v18 = vld [vmem:[%s963_s2 + $0x10] sm:$0xff]  ;;  %v307_v19 = vld [vmem:[%s964_s3 + $0x18] sm:$0xff]  ;;  %v556_v53 = vsub.f32 %v895_v12, %v891_v11  ;;  %v558_v57 = vsub.f32 %v885_v9, %v876_v7  ;;  %v557_v59 = vsub.f32 %v887_v10, %v882_v8 }
  0x12   : > { %721 = vmatpush3.msra.mxu1 %v885_v9  ;;  %708 = vmatprep.subr.mxu0 %v882_v8  ;;  %v903_v14 = vld [vmem:[%s272_s16] sm:$0xff]  ;;  %v303_v20 = vld [vmem:[%s963_s2 + $0x18] sm:$0xff] }
  0x13   : > { %514 = vperm.xlu0 %759, %v504_v5   ;;  %524 = vperm.xlu1 %760, %v506_v6   ;;  %v555_v54 = vsub.f32 %v903_v14, %v899_v13 }
  0x14   : > { %722 = vmatprep.subr.mxu1 %v887_v10  ;;  %709 = vmatpush3.msra.mxu0 %v882_v8 }
  0x15   : > { %723 = vmatpush3.msra.mxu1 %v887_v10  ;;  %710 = vmatprep.subr.mxu0 %v891_v11 }
  0x16   : > { %724 = vmatprep.subr.mxu1 %v895_v12  ;;  %711 = vmatpush3.msra.mxu0 %v891_v11 }
  0x17   : > { %725 = vmatpush3.msra.mxu1 %v895_v12  ;;  %712 = vmatprep.subr.mxu0 %v899_v13 }
  0x18   : > { %726 = vmatprep.subr.mxu1 %v903_v14  ;;  %713 = vmatpush3.msra.mxu0 %v899_v13 }
  0x19   : > { %727 = vmatpush3.msra.mxu1 %v903_v14  ;;  %715 = vmatmul.mubr.msk.f32.vlgmr.msra.gmra.mxu0 %vm308_vm0, %v305_v15 }
  0x1a   : > { %729 = vmatmul.mubr.msk.f32.vlgmr.msra.gmra.mxu1 %vm308_vm0, %v301_v16  ;;  %717 = vmatprep.mubr.msk.f32.mxu0 %vm308_vm0, %v306_v17 }
  0x1b   : > { %731 = vmatprep.mubr.msk.f32.mxu1 %vm308_vm0, %v302_v18 }
  0x1d   : > { %718 = vmatmul.mubr.msk.f32.gmra.mxu0 %vm308_vm0, %v307_v19 }
  0x1e   : > { %732 = vmatmul.mubr.msk.f32.gmra.mxu1 %vm308_vm0, %v303_v20 }
  0x8a   : > { %v510_v21 = vpop.permute.xlu0 %509  ;;  %v520_v22 = vpop.permute.xlu1 %519 }
  0x8e   : > { %v515_v25 = vpop.permute.xlu0 %514  ;;  %v525_v33 = vpop.permute.xlu1 %524 }
  0xd9   : > { %v716_v23 = vpop.f32.mrf.mxu0 }
  0xda   : > { %v730_v24 = vpop.f32.mrf.mxu1 }
  0xdb   : > { %v490_v26 = vadd.f32 %v730_v24, %v716_v23  ;;  %v387_v27 = vpop.f32.mrf.mxu0 }
  0xdc   : > { %v484_v28 = vpop.f32.mrf.mxu1 }
  0xdd   : > { %v528_v29 = vadd.f32 %v515_v25, %v490_v26  ;;  %v485_v30 = vadd.f32 %v484_v28, %v387_v27  ;;  %v719_v31 = vpop.f32.mrf.mxu0 }
  0xde   : > { %v733_v32 = vpop.f32.mrf.mxu1 }
  0xdf   : > { %v685_v34 = vmul.f32 -1.442695, %v528_v29  ;;  %v527_v35 = vadd.f32 %v510_v21, %v485_v30  ;;  %v500_v36 = vadd.f32 %v733_v32, %v719_v31  ;;  %v397_v37 = vpop.f32.mrf.mxu0 }
  0xe0   : > { %v494_v38 = vpop.f32.mrf.mxu1 }
  0xe1   : > { %761 = vpow2.f32 %v685_v34  ;;  %v684_v39 = vmul.f32 -1.442695, %v527_v35  ;;  %v530_v40 = vadd.f32 %v525_v33, %v500_v36  ;;  %v495_v41 = vadd.f32 %v494_v38, %v397_v37 }
  0xe3   : > { %763 = vpow2.f32 %v684_v39  ;;  %v687_v42 = vmul.f32 -1.442695, %v530_v40  ;;  %v529_v43 = vadd.f32 %v520_v22, %v495_v41 }
  0xe5   : > { %765 = vpow2.f32 %v687_v42  ;;  %v686_v44 = vmul.f32 -1.442695, %v529_v43 }
  0xe7   : > { %767 = vpow2.f32 %v686_v44 }
  0xee   : > { %v762_v45 = vpop.eup %761 }
  0xef   : > { %v544_v46 = vadd.f32 1.0, %v762_v45 }
  0xf0   : > { %v764_v47 = vpop.eup %763 }
  0xf1   : > { %769 = vrcp.f32 %v544_v46  ;;  %v543_v48 = vadd.f32 1.0, %v764_v47 }
  0xf2   : > { %v766_v49 = vpop.eup %765 }
  0xf3   : > { %771 = vrcp.f32 %v543_v48  ;;  %v546_v50 = vadd.f32 1.0, %v766_v49 }
  0xf4   : > { %v768_v51 = vpop.eup %767 }
  0xf5   : > { %773 = vrcp.f32 %v546_v50  ;;  %v545_v52 = vadd.f32 1.0, %v768_v51 }
  0xf7   : > { %775 = vrcp.f32 %v545_v52 }
  0xfe   : > { %v770_v55 = vpop.eup %769 }
  0xff   : > { %v560_v58 = vmul.f32 %v770_v55, %v556_v53 }
 0x100   : > { %v772_v56 = vpop.eup %771 }
 0x101   : > { %v559_v60 = vmul.f32 %v772_v56, %v555_v54  ;;  %v564_v0 = vadd.f32 %v560_v58, %v891_v11 }
 0x102   : > { %v774_v61 = vpop.eup %773 }
 0x103   : > { %v563_v62 = vadd.f32 %v559_v60, %v899_v13  ;;  %v562_v1 = vmul.f32 %v774_v61, %v558_v57  ;;  %569 = vst.msk [vmem:[%s290_s10 + $0x8] sm:$0xff] %vm567_vm1, %v564_v0 }
 0x104   : > { %v776_v63 = vpop.eup %775 }
 0x105   : > { %568 = vst.msk [vmem:[%s290_s10] sm:$0xff] %vm567_vm1, %v563_v62  ;;  %v561_v2 = vmul.f32 %v776_v63, %v557_v59  ;;  %v566_v4 = vadd.f32 %v562_v1, %v876_v7 }
 0x107   : > { %v565_v3 = vadd.f32 %v561_v2, %v882_v8  ;;  %571 = vst.msk [vmem:[%s290_s10 + $0x18] sm:$0xff] %vm567_vm1, %v566_v4 }
 0x109   : > { %570 = vst.msk [vmem:[%s290_s10 + $0x10] sm:$0xff] %vm567_vm1, %v565_v3 }
 0x10a PF: > { %s15_s20 = sadd.s32 1, %s799_s20   ;;  %s967_s18 = smov %s795_s19 }
 0x10b   : > { %p12_p5 = scmp.ge.s32.totalorder %s15_s20, 4   ;;  %s968_s19 = smov %s970_s21 }
 0x10d   :  { %14 = sbr.rel (!%p12_p5) target bundleno = 2 (0x2), region = 73 }

</bundles_post_ra>
